<compile_context>
chip_gen: v7x
topology: tpu7x:2x2x1
jax: 0.10.0
libtpu: 0.0.40
codegen_flags: <defaults>
</compile_context>

<pallas_src>
import functools

import jax
import jax.numpy as jnp
from jax.experimental import pallas as pl
from jax.experimental.pallas import tpu as pltpu


def _leaky_relu(x, slope=0.01):
    # max(x, slope*x) == LeakyReLU for 0 < slope < 1 (mul + max on the VPU).
    return jnp.maximum(x, slope * x)


def vanilla_ae_kernel(x_ref,
                      w1_ref, b1_ref,
                      w2_ref, b2_ref,
                      w3_ref, b3_ref,
                      w4_ref, b4_ref,
                      o_ref):
    x = x_ref[...]

    h = jnp.dot(x, w1_ref[...], preferred_element_type=jnp.float32)
    h = _leaky_relu(h + b1_ref[...].astype(jnp.float32))

    h = jnp.dot(h, w2_ref[...], preferred_element_type=jnp.float32)
    h = _leaky_relu(h + b2_ref[...].astype(jnp.float32))

    h = jnp.dot(h, w3_ref[...], preferred_element_type=jnp.float32)
    h = _leaky_relu(h + b3_ref[...].astype(jnp.float32))

    h = jnp.dot(h, w4_ref[...], preferred_element_type=jnp.float32)
    h = h + b4_ref[...].astype(jnp.float32)

    o_ref[...] = h.astype(o_ref.dtype)


def vanilla_ae_forward(x, params, *, batch_tile=512):
    """x: (B, data_dim). params: (in,out) weights 'w1'..'w4', (1,out) biases 'b1'..'b4'."""
    B, D = x.shape
    w1, b1 = params["w1"], params["b1"]
    w2, b2 = params["w2"], params["b2"]
    w3, b3 = params["w3"], params["b3"]
    w4, b4 = params["w4"], params["b4"]

    # Choose the batch tile: whole array for small batches (single, lane/row
    # dense block), otherwise a large multiple-of-8 tile to amortize the
    # ~0.35us-per-grid-step pipeline overhead and fill the MXU M dimension.
    if B <= batch_tile:
        bt = B
        grid = (1,)
    else:
        bt = max(8, (min(batch_tile, B) // 8) * 8)
        grid = (pl.cdiv(B, bt),)

    # VMEM budget: x and out blocks are double-buffered; weights/biases are
    # tiny but also double-buffered by default.  Cap below v7x's 64 MiB/TC.
    itemsize = jnp.dtype(x.dtype).itemsize
    io_bytes = 2 * 2 * bt * D * itemsize
    w_bytes = 2 * sum(int(p.size) * jnp.dtype(p.dtype).itemsize for p in params.values())
    vmem_limit = int(min(max(io_bytes + w_bytes + (8 << 20), 32 << 20), 48 << 20))

    def full_spec(shape):
        # whole-array block, replicated across the batch grid
        return pl.BlockSpec(shape, lambda i: tuple(0 for _ in shape))

    out = pl.pallas_call(
        vanilla_ae_kernel,
        out_shape=jax.ShapeDtypeStruct((B, D), x.dtype),
        grid_spec=pltpu.PrefetchScalarGridSpec(
            num_scalar_prefetch=0,
            grid=grid,
            in_specs=[
                pl.BlockSpec((bt, D), lambda i: (i, 0)),
                full_spec(w1.shape), full_spec(b1.shape),
                full_spec(w2.shape), full_spec(b2.shape),
                full_spec(w3.shape), full_spec(b3.shape),
                full_spec(w4.shape), full_spec(b4.shape),
            ],
            out_specs=pl.BlockSpec((bt, D), lambda i: (i, 0)),
        ),
        compiler_params=pltpu.CompilerParams(
            dimension_semantics=("parallel",),
            vmem_limit_bytes=vmem_limit),
    )(x, w1, b1, w2, b2, w3, b3, w4, b4)
    return out


def init_params(key, data_dim, dtype=jnp.float32):
    """Deterministic synthetic params; weights stored as (in,out), biases as (1,out)."""
    dims = [(data_dim, 64), (64, 32), (32, 64), (64, data_dim)]
    params = {}
    keys = jax.random.split(key, 2 * len(dims))
    for idx, (d_in, d_out) in enumerate(dims):
        bound = 1.0 / jnp.sqrt(jnp.float32(d_in))  # mimic nn.Linear uniform init scale
        w = jax.random.uniform(keys[2 * idx], (d_in, d_out),
                               minval=-bound, maxval=bound, dtype=jnp.float32)
        b = jax.random.uniform(keys[2 * idx + 1], (1, d_out),
                               minval=-bound, maxval=bound, dtype=jnp.float32)
        params[f"w{idx + 1}"] = w.astype(dtype)
        params[f"b{idx + 1}"] = b.astype(dtype)
    return params


def reference_forward(x, params):
    h = x.astype(jnp.float32)
    for i in range(1, 4):
        h = h @ params[f"w{i}"].astype(jnp.float32) + params[f"b{i}"].astype(jnp.float32)
        h = jnp.maximum(h, 0.01 * h)
    h = h @ params["w4"].astype(jnp.float32) + params["b4"].astype(jnp.float32)
    return h.astype(x.dtype)


if __name__ == "__main__":
    key = jax.random.PRNGKey(0)
    k_x, k_p, k_x2 = jax.random.split(key, 3)

    data_dim = 16
    params = init_params(k_p, data_dim)

    # Small batch: single full-array block (grid=(1,)).
    batch = 8
    x = jax.random.normal(k_x, (batch, data_dim), dtype=jnp.float32)
    out = jax.block_until_ready(vanilla_ae_forward(x, params))
    ref = reference_forward(x, params)
    assert out.shape == (batch, data_dim)
    assert jnp.allclose(out, ref, atol=1e-5, rtol=1e-5)

    # Larger, non-multiple batch: exercises the tiled path with a partial tile.
    batch2 = 40
    x2 = jax.random.normal(k_x2, (batch2, data_dim), dtype=jnp.float32)
    out2 = jax.block_until_ready(vanilla_ae_forward(x2, params, batch_tile=16))
    ref2 = reference_forward(x2, params)
    assert out2.shape == (batch2, data_dim)
    assert jnp.allclose(out2, ref2, atol=1e-5, rtol=1e-5)

    print("KERNEL_OK")
</pallas_src>

<mosaic_0001>
module attributes {stable_mosaic.version = 11 : i64} {
  func.func @vanilla_ae_kernel(%arg0: i32, %arg1: memref<8x16xf32, #tpu.memory_space<vmem>>, %arg2: memref<16x64xf32, #tpu.memory_space<vmem>>, %arg3: memref<1x64xf32, #tpu.memory_space<vmem>>, %arg4: memref<64x32xf32, #tpu.memory_space<vmem>>, %arg5: memref<1x32xf32, #tpu.memory_space<vmem>>, %arg6: memref<32x64xf32, #tpu.memory_space<vmem>>, %arg7: memref<1x64xf32, #tpu.memory_space<vmem>>, %arg8: memref<64x16xf32, #tpu.memory_space<vmem>>, %arg9: memref<1x16xf32, #tpu.memory_space<vmem>>, %arg10: memref<8x16xf32, #tpu.memory_space<vmem>>) attributes {dimension_semantics = [#tpu.dimension_semantics<parallel>], iteration_bounds = array<i64: 1>, scalar_prefetch = 0 : i64, scratch_operands = 0 : i64, tpu.core_type = #tpu.core_type<tc>, window_params = [{transform_indices = @transform_0, window_bounds = array<i64: 8, 16>}, {pipeline_mode = #tpu.pipeline_mode<synchronous>, transform_indices = @transform_1, window_bounds = array<i64: 16, 64>}, {pipeline_mode = #tpu.pipeline_mode<synchronous>, transform_indices = @transform_2, window_bounds = array<i64: 1, 64>}, {pipeline_mode = #tpu.pipeline_mode<synchronous>, transform_indices = @transform_3, window_bounds = array<i64: 64, 32>}, {pipeline_mode = #tpu.pipeline_mode<synchronous>, transform_indices = @transform_4, window_bounds = array<i64: 1, 32>}, {pipeline_mode = #tpu.pipeline_mode<synchronous>, transform_indices = @transform_5, window_bounds = array<i64: 32, 64>}, {pipeline_mode = #tpu.pipeline_mode<synchronous>, transform_indices = @transform_6, window_bounds = array<i64: 1, 64>}, {pipeline_mode = #tpu.pipeline_mode<synchronous>, transform_indices = @transform_7, window_bounds = array<i64: 64, 16>}, {pipeline_mode = #tpu.pipeline_mode<synchronous>, transform_indices = @transform_8, window_bounds = array<i64: 1, 16>}, {transform_indices = @transform_9, window_bounds = array<i64: 8, 16>}]} {
    %c0 = arith.constant 0 : index
    %c0_0 = arith.constant 0 : index
    %0 = vector.load %arg1[%c0, %c0_0] : memref<8x16xf32, #tpu.memory_space<vmem>>, vector<8x16xf32>
    %c0_1 = arith.constant 0 : index
    %c0_2 = arith.constant 0 : index
    %1 = vector.load %arg2[%c0_1, %c0_2] : memref<16x64xf32, #tpu.memory_space<vmem>>, vector<16x64xf32>
    %cst = arith.constant dense<0.000000e+00> : vector<8x64xf32>
    %2 = tpu.matmul %0, %1, %cst {dimension_numbers = #tpu.dot_dimension_numbers<[1], [0], [0], [1], [0, 0, 1, 1], [], []>} : vector<8x16xf32>, vector<16x64xf32>, vector<8x64xf32> -> vector<8x64xf32>
    %c0_3 = arith.constant 0 : index
    %c0_4 = arith.constant 0 : index
    %3 = vector.load %arg3[%c0_3, %c0_4] : memref<1x64xf32, #tpu.memory_space<vmem>>, vector<1x64xf32>
    %4 = vector.broadcast %3 : vector<1x64xf32> to vector<8x64xf32>
    %5 = arith.addf %2, %4 : vector<8x64xf32>
    %cst_5 = arith.constant 0.00999999977 : f32
    %6 = vector.broadcast %cst_5 : f32 to vector<8x64xf32>
    %7 = arith.mulf %6, %5 : vector<8x64xf32>
    %8 = arith.maximumf %5, %7 : vector<8x64xf32>
    %c0_6 = arith.constant 0 : index
    %c0_7 = arith.constant 0 : index
    %9 = vector.load %arg4[%c0_6, %c0_7] : memref<64x32xf32, #tpu.memory_space<vmem>>, vector<64x32xf32>
    %cst_8 = arith.constant dense<0.000000e+00> : vector<8x32xf32>
    %10 = tpu.matmul %8, %9, %cst_8 {dimension_numbers = #tpu.dot_dimension_numbers<[1], [0], [0], [1], [0, 0, 1, 1], [], []>} : vector<8x64xf32>, vector<64x32xf32>, vector<8x32xf32> -> vector<8x32xf32>
    %c0_9 = arith.constant 0 : index
    %c0_10 = arith.constant 0 : index
    %11 = vector.load %arg5[%c0_9, %c0_10] : memref<1x32xf32, #tpu.memory_space<vmem>>, vector<1x32xf32>
    %12 = vector.broadcast %11 : vector<1x32xf32> to vector<8x32xf32>
    %13 = arith.addf %10, %12 : vector<8x32xf32>
    %cst_11 = arith.constant 0.00999999977 : f32
    %14 = vector.broadcast %cst_11 : f32 to vector<8x32xf32>
    %15 = arith.mulf %14, %13 : vector<8x32xf32>
    %16 = arith.maximumf %13, %15 : vector<8x32xf32>
    %c0_12 = arith.constant 0 : index
    %c0_13 = arith.constant 0 : index
    %17 = vector.load %arg6[%c0_12, %c0_13] : memref<32x64xf32, #tpu.memory_space<vmem>>, vector<32x64xf32>
    %cst_14 = arith.constant dense<0.000000e+00> : vector<8x64xf32>
    %18 = tpu.matmul %16, %17, %cst_14 {dimension_numbers = #tpu.dot_dimension_numbers<[1], [0], [0], [1], [0, 0, 1, 1], [], []>} : vector<8x32xf32>, vector<32x64xf32>, vector<8x64xf32> -> vector<8x64xf32>
    %c0_15 = arith.constant 0 : index
    %c0_16 = arith.constant 0 : index
    %19 = vector.load %arg7[%c0_15, %c0_16] : memref<1x64xf32, #tpu.memory_space<vmem>>, vector<1x64xf32>
    %20 = vector.broadcast %19 : vector<1x64xf32> to vector<8x64xf32>
    %21 = arith.addf %18, %20 : vector<8x64xf32>
    %cst_17 = arith.constant 0.00999999977 : f32
    %22 = vector.broadcast %cst_17 : f32 to vector<8x64xf32>
    %23 = arith.mulf %22, %21 : vector<8x64xf32>
    %24 = arith.maximumf %21, %23 : vector<8x64xf32>
    %c0_18 = arith.constant 0 : index
    %c0_19 = arith.constant 0 : index
    %25 = vector.load %arg8[%c0_18, %c0_19] : memref<64x16xf32, #tpu.memory_space<vmem>>, vector<64x16xf32>
    %cst_20 = arith.constant dense<0.000000e+00> : vector<8x16xf32>
    %26 = tpu.matmul %24, %25, %cst_20 {dimension_numbers = #tpu.dot_dimension_numbers<[1], [0], [0], [1], [0, 0, 1, 1], [], []>} : vector<8x64xf32>, vector<64x16xf32>, vector<8x16xf32> -> vector<8x16xf32>
    %c0_21 = arith.constant 0 : index
    %c0_22 = arith.constant 0 : index
    %27 = vector.load %arg9[%c0_21, %c0_22] : memref<1x16xf32, #tpu.memory_space<vmem>>, vector<1x16xf32>
    %28 = vector.broadcast %27 : vector<1x16xf32> to vector<8x16xf32>
    %29 = arith.addf %26, %28 : vector<8x16xf32>
    %c0_23 = arith.constant 0 : index
    %c0_24 = arith.constant 0 : index
    %30 = vector.load %arg10[%c0_23, %c0_24] : memref<8x16xf32, #tpu.memory_space<vmem>>, vector<8x16xf32>
    tpu.vector_store %arg10[%c0_23, %c0_24], %29 {strides = array<i32>} : memref<8x16xf32, #tpu.memory_space<vmem>>, vector<8x16xf32>,
    return
  }
  func.func @transform_0(%arg0: i32) -> (i32, i32) {
    %c0_i32 = arith.constant 0 : i32
    %c0_i32_0 = arith.constant 0 : i32
    return %arg0, %c0_i32 : i32, i32
  }
  func.func @transform_1(%arg0: i32) -> (i32, i32) {
    %c0_i32 = arith.constant 0 : i32
    %c0_i32_0 = arith.constant 0 : i32
    %c0_i32_1 = arith.constant 0 : i32
    return %c0_i32, %c0_i32_0 : i32, i32
  }
  func.func @transform_2(%arg0: i32) -> (i32, i32) {
    %c0_i32 = arith.constant 0 : i32
    %c0_i32_0 = arith.constant 0 : i32
    %c0_i32_1 = arith.constant 0 : i32
    return %c0_i32, %c0_i32_0 : i32, i32
  }
  func.func @transform_3(%arg0: i32) -> (i32, i32) {
    %c0_i32 = arith.constant 0 : i32
    %c0_i32_0 = arith.constant 0 : i32
    %c0_i32_1 = arith.constant 0 : i32
    return %c0_i32, %c0_i32_0 : i32, i32
  }
  func.func @transform_4(%arg0: i32) -> (i32, i32) {
    %c0_i32 = arith.constant 0 : i32
    %c0_i32_0 = arith.constant 0 : i32
    %c0_i32_1 = arith.constant 0 : i32
    return %c0_i32, %c0_i32_0 : i32, i32
  }
  func.func @transform_5(%arg0: i32) -> (i32, i32) {
    %c0_i32 = arith.constant 0 : i32
    %c0_i32_0 = arith.constant 0 : i32
    %c0_i32_1 = arith.constant 0 : i32
    return %c0_i32, %c0_i32_0 : i32, i32
  }
  func.func @transform_6(%arg0: i32) -> (i32, i32) {
    %c0_i32 = arith.constant 0 : i32
    %c0_i32_0 = arith.constant 0 : i32
    %c0_i32_1 = arith.constant 0 : i32
    return %c0_i32, %c0_i32_0 : i32, i32
  }
  func.func @transform_7(%arg0: i32) -> (i32, i32) {
    %c0_i32 = arith.constant 0 : i32
    %c0_i32_0 = arith.constant 0 : i32
    %c0_i32_1 = arith.constant 0 : i32
    return %c0_i32, %c0_i32_0 : i32, i32
  }
  func.func @transform_8(%arg0: i32) -> (i32, i32) {
    %c0_i32 = arith.constant 0 : i32
    %c0_i32_0 = arith.constant 0 : i32
    %c0_i32_1 = arith.constant 0 : i32
    return %c0_i32, %c0_i32_0 : i32, i32
  }
  func.func @transform_9(%arg0: i32) -> (i32, i32) {
    %c0_i32 = arith.constant 0 : i32
    %c0_i32_0 = arith.constant 0 : i32
    return %arg0, %c0_i32 : i32, i32
  }
}

</mosaic_0001>

<bundles_post_ra>
// kernel: tpu_custom_call.1
= control target key start
LH: loop header
LB: loop body
LE: loop exit
PB: predicated region body
PF: predicated region fallthrough
CT: control target
= control target key end

     0   :  { %v551_v2 = vmov 0.0|0.0   ;;  %vm552_vm0 = vmmov 0   ;;  %v553_v4 = vmov 0.0   ;;  %s721_s0 = inlined_call_operand.vmem [shape: f32[8,16], index: 0, kind: input, shape index: {}]   ;;  %s722_s1 = inlined_call_operand.vmem [shape: f32[16,64], index: 1, kind: input, shape index: {}]   ;;  %s723_s2 = inlined_call_operand.vmem [shape: f32[1,64], index: 2, kind: input, shape index: {}]   ;;  %s724_s3 = inlined_call_operand.vmem [shape: f32[64,32], index: 3, kind: input, shape index: {}]   ;;  %s725_s4 = inlined_call_operand.vmem [shape: f32[1,32], index: 4, kind: input, shape index: {}]   ;;  %s726_s5 = inlined_call_operand.vmem [shape: f32[32,64], index: 5, kind: input, shape index: {}]   ;;  %s727_s6 = inlined_call_operand.vmem [shape: f32[1,64], index: 6, kind: input, shape index: {}]   ;;  %s728_s7 = inlined_call_operand.vmem [shape: f32[64,16], index: 7, kind: input, shape index: {}]   ;;  %s729_s8 = inlined_call_operand.vmem [shape: f32[1,16], index: 8, kind: input, shape index: {}]   ;;  %s730_s9 = inlined_call_operand.hbm [shape: f32[8,16], index: 9, kind: output, shape index: {}]  }
   0x1   :  { %v34_v0 = vld [vmem:[%s722_s1] sm:$0xff]  ;;  %v35_v1 = vld [vmem:[%s722_s1 + $0x8] sm:$0xff]  ;;  %490 = vmatprep.subr.bf16.mxu1 %v551_v2  ;;  %438 = vmatprep.mubr.msk.f32.mxu1 %vm552_vm0, %v553_v4 }
   0x2   :  { %v491_v3 = vpack.c.bf16 %v35_v1, %v34_v0  ;;  %v119_v5 = vld [vmem:[%s724_s3] sm:$0xff]  ;;  %v120_v6 = vld [vmem:[%s724_s3 + $0x8] sm:$0xff]  ;;  %505 = vmatprep.subr.bf16.mxu0 %v551_v2  ;;  %468 = vmatprep.mubr.msk.f32.mxu0 %vm552_vm0, %v553_v4 }
   0x3   :  { %14 = vsyncpa [#allocation3], 0  ;;  %v33_v7 = vld [vmem:[%s721_s0] sm:$0xff]  ;;  %vm43_vm1 = vcmask 130048   ;;  %v494_v8 = vpack.c.bf16 %v120_v6, %v119_v5  ;;  %v121_v9 = vld [vmem:[%s724_s3 + $0x10] sm:$0xff]  ;;  %vm134_vm2 = vcmask 523264  }
   0x4   :  { %492 = vmatpush3.bf16.msra.mxu1 %v491_v3  ;;  %v122_v10 = vld [vmem:[%s724_s3 + $0x18] sm:$0xff]  ;;  %v123_v12 = vld [vmem:[%s724_s3 + $0x20] sm:$0xff]  ;;  %v124_v13 = vld [vmem:[%s724_s3 + $0x28] sm:$0xff]  ;;  %vm221_vm3 = vcmask 261120  }
   0x5   :  { %493 = vmatprep.subr.bf16.mxu1 %v551_v2  ;;  %v497_v11 = vpack.c.bf16 %v122_v10, %v121_v9  ;;  %v500_v14 = vpack.c.bf16 %v124_v13, %v123_v12  ;;  %v125_v15 = vld [vmem:[%s724_s3 + $0x30] sm:$0xff]  ;;  %v126_v16 = vld [vmem:[%s724_s3 + $0x38] sm:$0xff]  ;;  %v400_v18 = vld [vmem:[%s723_s2] ss:$0 sm:$0xff]  ;;  %s554_s3 = smov [#allocation2]  }
   0x6   :  { %v503_v17 = vpack.c.bf16 %v126_v16, %v125_v15  ;;  %v210_v24 = vld [vmem:[%s726_s5] sm:$0xff]  ;;  %v211_v25 = vld [vmem:[%s726_s5 + $0x8] sm:$0xff]  ;;  %v212_v27 = vld [vmem:[%s726_s5 + $0x10] sm:$0xff]  ;;  %s392_s2 = sshll.u32 %s554_s3, 4  ;;  %s393_s2 = int_to_ptr.vmem [resolvable:$true] %s392_s2 }
   0x7   :  { %439 = vmatmul.mubr.msk.f32.vlgmr.msra.gmra.mrb[0].mxu1 %vm43_vm1, %v33_v7  ;;  %v506_v26 = vpack.c.bf16 %v211_v25, %v210_v24  ;;  %v213_v28 = vld [vmem:[%s726_s5 + $0x18] sm:$0xff]  ;;  %v402_v30 = vld [vmem:[%s725_s4] ss:$0 sm:$0xff]  ;;  %v298_v35 = vld [vmem:[%s728_s7 + $0x8] sm:$0xff]  ;;  %p532_p1 = scmp.lt.s32.totalorder %s393_s2, %s393_s2 }
   0x8   :  { %495 = vmatpush3.bf16.msra.mxu1 %v494_v8  ;;  %457 = vmatprep.mubr.msk.f32.mxu1 %vm552_vm0, %v553_v4  ;;  %v509_v29 = vpack.c.bf16 %v213_v28, %v212_v27  ;;  %v297_v34 = vld [vmem:[%s728_s7] sm:$0xff]  ;;  %v299_v39 = vld [vmem:[%s728_s7 + $0x10] sm:$0xff]  ;;  %v300_v40 = vld [vmem:[%s728_s7 + $0x18] sm:$0xff] }
   0x9   :  { %496 = vmatprep.subr.bf16.mxu1 %v551_v2  ;;  %507 = vmatpush3.bf16.msra.mxu0 %v506_v26  ;;  %v512_v37 = vpack.c.bf16 %v298_v35, %v297_v34  ;;  %v515_v41 = vpack.c.bf16 %v300_v40, %v299_v39  ;;  %v301_v42 = vld [vmem:[%s728_s7 + $0x20] sm:$0xff]  ;;  %v302_v43 = vld [vmem:[%s728_s7 + $0x28] sm:$0xff]  ;;  %v303_v45 = vld [vmem:[%s728_s7 + $0x30] sm:$0xff] }
   0xa   :  { %508 = vmatprep.subr.bf16.mxu0 %v551_v2  ;;  %v518_v44 = vpack.c.bf16 %v302_v43, %v301_v42  ;;  %v304_v46 = vld [vmem:[%s728_s7 + $0x38] sm:$0xff]  ;;  %v404_v48 = vld [vmem:[%s727_s6] ss:$0 sm:$0xff]  ;;  %s527_s6 = scalar_lea.vmem %s393_s2, 128 }
   0xb   :  { %v521_v47 = vpack.c.bf16 %v304_v46, %v303_v45  ;;  %v406_v54 = vld [vmem:[%s729_s8] ss:$0 sm:$0xff]  ;;  %p528_p0 = scmp.ne.s32.totalorder %s393_s2, %s527_s6  ;;  %p533_p2 = scmp.lt.s32.totalorder %s527_s6, %s527_s6 }
   0xc   :  { %498 = vmatpush3.bf16.msra.mxu1 %v497_v11 }
   0xd   :  { %499 = vmatprep.subr.bf16.mxu1 %v551_v2  ;;  %510 = vmatpush3.bf16.msra.mxu0 %v509_v29  ;;  %p534_p3 = por %p533_p2, %p532_p1 }
   0xe   :  { %511 = vmatprep.subr.bf16.mxu0 %v551_v2 }
   0xf   :  { %p535_p4 = pnand %p534_p3, %p528_p0 }
  0x10   :  { %501 = vmatpush3.bf16.msra.mxu1 %v500_v14 }
  0x11   :  { %502 = vmatprep.subr.bf16.mxu1 %v551_v2 }
  0x14   :  { %504 = vmatpush3.bf16.msra.mxu1 %v503_v17 }
  0xda   :  { %v113_v19 = vpop.f32.mrb[0].mxu1 }
  0xdb   :  { %v114_v20 = vadd.f32 %v400_v18, %v113_v19  ;;  %v440_v21 = vpop.f32.mrb[1].mxu1 }
  0xdd   :  { %v117_v22 = vmul.f32 0.01, %v114_v20 }
  0xdf   :  { %v118_v23 = vmax.f32 %v114_v20, %v117_v22 }
  0xe1   :  { %458 = vmatmul.mubr.msk.f32.vlgmr.msra.gmra.mrb[2].mxu1 %vm134_vm2, %v118_v23 }
 0x1b4   :  { %v204_v31 = vpop.f32.mrb[2].mxu1 }
 0x1b5   :  { %v205_v32 = vadd.f32 %v402_v30, %v204_v31  ;;  %v459_v33 = vpop.f32.mrb[3].mxu1 }
 0x1b7   :  { %v208_v36 = vmul.f32 0.01, %v205_v32 }
 0x1b9   :  { %v209_v38 = vmax.f32 %v205_v32, %v208_v36 }
 0x1bb   :  { %469 = vmatmul.mubr.msk.f32.vlgmr.msra.gmra.mrb[0].mxu0 %vm221_vm3, %v209_v38 }
 0x1bc   :  { %513 = vmatpush3.bf16.msra.mxu0 %v512_v37  ;;  %487 = vmatprep.mubr.msk.f32.mxu0 %vm552_vm0, %v553_v4 }
 0x1bd   :  { %514 = vmatprep.subr.bf16.mxu0 %v551_v2 }
 0x1c0   :  { %516 = vmatpush3.bf16.msra.mxu0 %v515_v41 }
 0x1c1   :  { %517 = vmatprep.subr.bf16.mxu0 %v551_v2 }
 0x1c4   :  { %519 = vmatpush3.bf16.msra.mxu0 %v518_v44 }
 0x1c5   :  { %520 = vmatprep.subr.bf16.mxu0 %v551_v2 }
 0x1c8   :  { %522 = vmatpush3.bf16.msra.mxu0 %v521_v47 }
 0x28e   :  { %v291_v49 = vpop.f32.mrb[0].mxu0 }
 0x28f   :  { %v292_v50 = vadd.f32 %v404_v48, %v291_v49  ;;  %v470_v51 = vpop.f32.mrb[1].mxu0 }
 0x291   :  { %v295_v52 = vmul.f32 0.01, %v292_v50 }
 0x293   :  { %v296_v53 = vmax.f32 %v292_v50, %v295_v52 }
 0x295   :  { %488 = vmatmul.mubr.msk.f32.vlgmr.msra.gmra.mrb[2].mxu0 %vm134_vm2, %v296_v53 }
 0x368   :  { %v381_v55 = vpop.f32.mrb[2].mxu0 }
 0x369   :  { %v382_v56 = vadd.f32 %v406_v54, %v381_v55  ;;  %v489_v57 = vpop.f32.mrb[3].mxu0 }
 0x36b   :  { %385 = vst.msk [vmem:[#allocation2] sm:$0xff] %vm43_vm1, %v382_v56 }
 0x36c   :  { %538 = shalt.err (!%p535_p4)
}
 0x36d   :  { %s539_s14 = scalar_lea.hbm %s730_s9, 128 }
 0x36e   :  { %p540_p5 = scmp.ne.s32.totalorder %s730_s9, %s539_s14  ;;  %p543_p6 = scmp.lt.u32.totalorder %s539_s14, %s730_s9 }
 0x370   :  { %p545_p7 = pnand %p543_p6, %p540_p5 }
 0x372   :  { %548 = shalt.err (!%p545_p7)
}
 0x373   :  { %395 = dma.vmem_to_hbm [thread:$0]  %s393_s2, 128, %s730_s9, [#allocation3]  }
 0x374   :  { %549 = dma.done.wait [#allocation3], 128  }
 0x375   :  { %550 = vsyncadd [#allocation3], 4294967168 }
 0x376   :  { %399 = vsyncpa [#allocation3], 1 }

</bundles_post_ra>
